<compile_context>
chip_gen: v6e
topology: v6e:2x2x1
jax: 0.10.0
libtpu: 0.0.40
codegen_flags: <defaults>
</compile_context>

<pallas_src>
import math

import jax
import jax.numpy as jnp
from jax import lax
from jax.experimental import pallas as pl
from jax.experimental.pallas import tpu as pltpu

K = 3          # umbrella neighbors (self included, as in the reference `group`)
C_IN = 9       # [normal(3), pos(1), center(3), dist(1), area(1)]
C_OUT = 32
MAX_TILE = 2048  # points per grid step (lane axis); multiple of 128


def _fixed_rotate(xyz):
    rot = jnp.array(
        [[0.5, -0.5, 0.7071], [0.7071, 0.7071, 0.0], [-0.5, 0.5, 0.7071]],
        dtype=xyz.dtype)
    return xyz @ rot


def _sfe_kernel(coords_ref, sign_ref, w1_ref, b1_ref, w2_ref, b2_ref, out_ref, feat_ref):
    """Channel-major SFE tile.

    coords_ref: (K*3, T)   sorted relative neighbor coords; rows = channels, cols = points
    sign_ref:   (1, T)     per-point random-inverse sign (per-batch draw)
    w1_ref:     (C_OUT, C_IN)   BN-folded first 1x1 conv weight (bf16)
    b1_ref:     (C_OUT, 1)      folded bias (f32)
    w2_ref:     (C_OUT, C_OUT)  second 1x1 conv weight (bf16)
    b2_ref:     (C_OUT, 1)
    out_ref:    (C_OUT, T)      sum over the K umbrella groups of the MLP output
    feat_ref:   (C_IN, K*T)     f32 scratch holding the stacked per-group features
    """
    tile = out_ref.shape[1]
    coords = coords_ref[...].astype(jnp.float32)        # (9, T)
    sign = sign_ref[...].astype(jnp.float32)            # (1, T)

    # per-group x/y/z rows, each a (1, T) lane-dense vector
    P = [(coords[3 * g + 0:3 * g + 1, :],
          coords[3 * g + 1:3 * g + 2, :],
          coords[3 * g + 2:3 * g + 3, :]) for g in range(K)]

    raw = []
    for g in range(K):
        px, py, pz = P[g]
        qx, qy, qz = P[(g + 1) % K]          # torch.roll(shifts=-1) partner
        # triangle (0, p, q): edges e1=p, e2=q, normal = e1 x e2
        cx = py * qz - pz * qy
        cy = pz * qx - px * qz
        cz = px * qy - py * qx
        nrm2 = cx * cx + cy * cy + cz * cz
        degen = nrm2 == 0.0                  # where torch would produce NaN normals
        inv = lax.rsqrt(jnp.where(degen, 1.0, nrm2))   # rsqrt instead of sqrt+div (EUP)
        nx, ny, nz = cx * inv, cy * inv, cz * inv
        nrm = nrm2 * inv                     # == sqrt(nrm2); 0 for degenerate groups
        ctx, cty, ctz = (px + qx) / 3.0, (py + qy) / 3.0, (pz + qz) / 3.0  # centroid
        dx, dy, dz = px - qx, py - qy, pz - qz
        dist = jnp.sqrt(dx * dx + dy * dy + dz * dz)   # outer-edge length
        area = 0.5 * nrm                               # triangle area
        raw.append(dict(nx=nx, ny=ny, nz=nz, degen=degen,
                        cx=ctx, cy=cty, cz=ctz, dist=dist, area=area))

    # sign convention: first group's normal-x positive, then per-batch random inverse
    pos_mask = jnp.where(raw[0]["nx"] > 0.0, 1.0, -1.0)
    flip = pos_mask * sign
    for g in range(K):
        raw[g]["nx"] = raw[g]["nx"] * flip
        raw[g]["ny"] = raw[g]["ny"] * flip
        raw[g]["nz"] = raw[g]["nz"] * flip

    inv_sqrt3 = 1.0 / math.sqrt(3.0)
    for g in range(K):
        r = raw[g]
        r["pos"] = (r["nx"] * r["cx"] + r["ny"] * r["cy"] + r["nz"] * r["cz"]) * inv_sqrt3

    # NaN sanitization (check_nan_umb): replace degenerate groups with the first valid one
    def first_valid(field):
        out = raw[K - 1][field]
        for g in range(K - 2, -1, -1):
            out = jnp.where(raw[g]["degen"], out, raw[g][field])
        all_degen = raw[0]["degen"]
        for g in range(1, K):
            all_degen = jnp.logical_and(all_degen, raw[g]["degen"])
        return jnp.where(all_degen, raw[0][field], out)

    fields = ("nx", "ny", "nz", "cx", "cy", "cz", "pos")
    fv = {f: first_valid(f) for f in fields}
    for g in range(K):
        m = raw[g]["degen"]
        for f in fields:
            raw[g][f] = jnp.where(m, fv[f], raw[g][f])

    # assemble the (C_IN, K*T) feature slab: lane-dense row stores into VMEM scratch
    order = ("nx", "ny", "nz", "pos", "cx", "cy", "cz", "dist", "area")
    for g in range(K):
        base = g * tile
        for row, f in enumerate(order):
            feat_ref[row:row + 1, base:base + tile] = raw[g][f]

    # fused MLP over all K groups: one matmul pair on bf16 operands, f32 accumulation
    feat = feat_ref[...].astype(jnp.bfloat16)                               # (9, K*T)
    h = jnp.dot(w1_ref[...], feat, preferred_element_type=jnp.float32) + b1_ref[...]
    h = jnp.maximum(h, 0.0)
    o = jnp.dot(w2_ref[...], h.astype(jnp.bfloat16),
                preferred_element_type=jnp.float32)                         # (C_OUT, K*T)
    acc = o[:, 0:tile] + o[:, tile:2 * tile] + o[:, 2 * tile:3 * tile]      # sum over K
    out_ref[...] = (acc + float(K) * b2_ref[...]).astype(out_ref.dtype)


def sfe_forward(center, offset, params, key, max_tile=MAX_TILE):
    """center: (N, 3) point coords; offset: (B,) cumulative batch sizes."""
    N = center.shape[0]
    batch_id = jnp.searchsorted(offset, jnp.arange(N, dtype=offset.dtype), side="right")

    # --- kNN neighbor search (glue) ---
    # TODO(synk): pointops.knnquery kept in plain JAX as a dense O(N^2) top_k; for large N
    # this dominates end-to-end time and should be tiled per batch (outside this kernel).
    d2 = jnp.sum((center[:, None, :] - center[None, :, :]) ** 2, axis=-1)
    d2 = jnp.where(batch_id[:, None] == batch_id[None, :], d2, jnp.inf)
    _, idx = lax.top_k(-d2, K)                           # (N, K), ascending distance
    rel = center[idx] - center[:, None, :]               # (N, K, 3) relative coords
    rot = _fixed_rotate(rel)
    phi = jnp.arctan2(rot[..., 1], rot[..., 0])          # xyz2sphere(...)[..., 2]
    order = jnp.argsort(phi, axis=-1)                    # sort by azimuth
    sorted_rel = jnp.take_along_axis(rel, order[..., None], axis=1)     # (N, K, 3)
    coords_cm = sorted_rel.reshape(N, K * 3).T.astype(jnp.float32)      # (K*3, N)

    # per-batch random inverse sign (random_inv=True), deterministic key
    B = offset.shape[0]
    signs_b = jax.random.randint(key, (B,), 0, 2).astype(jnp.float32) * 2.0 - 1.0
    sign_cm = signs_b[batch_id][None, :]                                # (1, N)

    # fold eval-mode BatchNorm1d into conv1; channel-major weights, bf16 MXU operands
    scale = params["gamma"] / jnp.sqrt(params["var"] + 1e-5)
    w1f = (params["w1"] * scale[:, None]).astype(jnp.bfloat16)          # (C_OUT, C_IN)
    b1f = ((params["b1"] - params["mean"]) * scale
           + params["beta"])[:, None].astype(jnp.float32)               # (C_OUT, 1)
    w2f = params["w2"].astype(jnp.bfloat16)                             # (C_OUT, C_OUT)
    b2f = params["b2"][:, None].astype(jnp.float32)                     # (C_OUT, 1)

    # lane-dense point tiling: tile is a multiple of 128, as large as useful
    n128 = ((N + 127) // 128) * 128
    tile = min(max_tile, n128)
    n_pad = ((N + tile - 1) // tile) * tile
    coords_p = jnp.zeros((K * 3, n_pad), jnp.float32).at[:, :N].set(coords_cm)
    sign_p = jnp.ones((1, n_pad), jnp.float32).at[:, :N].set(sign_cm)

    out_cm = pl.pallas_call(
        _sfe_kernel,
        out_shape=jax.ShapeDtypeStruct((C_OUT, n_pad), jnp.float32),
        grid_spec=pltpu.PrefetchScalarGridSpec(
            num_scalar_prefetch=0,
            grid=(n_pad // tile,),
            in_specs=[
                pl.BlockSpec((K * 3, tile), lambda i: (0, i)),
                pl.BlockSpec((1, tile), lambda i: (0, i)),
                pl.BlockSpec((C_OUT, C_IN), lambda i: (0, 0)),
                pl.BlockSpec((C_OUT, 1), lambda i: (0, 0)),
                pl.BlockSpec((C_OUT, C_OUT), lambda i: (0, 0)),
                pl.BlockSpec((C_OUT, 1), lambda i: (0, 0)),
            ],
            out_specs=pl.BlockSpec((C_OUT, tile), lambda i: (0, i)),
            scratch_shapes=[pltpu.VMEM((C_IN, K * tile), jnp.float32)],
        ),
        compiler_params=pltpu.CompilerParams(dimension_semantics=("parallel",)),
    )(coords_p, sign_p, w1f, b1f, w2f, b2f)
    return out_cm[:, :N].T                                              # (N, C_OUT)


if __name__ == "__main__":
    key = jax.random.PRNGKey(0)
    (kc, kw1, kb1, kg, kbt, km, kv, kw2, kb2, kinv) = jax.random.split(key, 10)

    # 2 batches of 32 points each (offset = cumulative counts, as in pointops)
    N_PER, B = 32, 2
    N = N_PER * B
    center = jax.random.normal(kc, (N, 3), jnp.float32)
    offset = jnp.array([N_PER, 2 * N_PER], jnp.int32)

    params = dict(
        w1=0.2 * jax.random.normal(kw1, (C_OUT, C_IN), jnp.float32),     # Conv1d(9->32, k=1)
        b1=0.1 * jax.random.normal(kb1, (C_OUT,), jnp.float32),
        gamma=1.0 + 0.1 * jax.random.normal(kg, (C_OUT,), jnp.float32),  # BatchNorm1d(32)
        beta=0.1 * jax.random.normal(kbt, (C_OUT,), jnp.float32),
        mean=0.1 * jax.random.normal(km, (C_OUT,), jnp.float32),
        var=1.0 + 0.1 * jnp.abs(jax.random.normal(kv, (C_OUT,), jnp.float32)),
        w2=0.2 * jax.random.normal(kw2, (C_OUT, C_OUT), jnp.float32),    # Conv1d(32->32, k=1)
        b2=0.1 * jax.random.normal(kb2, (C_OUT,), jnp.float32),
    )

    out = jax.block_until_ready(jax.jit(sfe_forward)(center, offset, params, kinv))
    assert out.shape == (N, C_OUT), out.shape
    assert bool(jnp.all(jnp.isfinite(out)))
    print("KERNEL_OK")
</pallas_src>

<mosaic_0001>
module attributes {stable_mosaic.version = 11 : i64} {
  func.func @_sfe_kernel(%arg0: i32, %arg1: memref<9x128xf32, #tpu.memory_space<vmem>>, %arg2: memref<1x128xf32, #tpu.memory_space<vmem>>, %arg3: memref<32x9xbf16, #tpu.memory_space<vmem>>, %arg4: memref<32x1xf32, #tpu.memory_space<vmem>>, %arg5: memref<32x32xbf16, #tpu.memory_space<vmem>>, %arg6: memref<32x1xf32, #tpu.memory_space<vmem>>, %arg7: memref<32x128xf32, #tpu.memory_space<vmem>>, %arg8: memref<9x384xf32, #tpu.memory_space<vmem>>) attributes {dimension_semantics = [#tpu.dimension_semantics<parallel>], iteration_bounds = array<i64: 1>, scalar_prefetch = 0 : i64, scratch_operands = 1 : i64, tpu.core_type = #tpu.core_type<tc>, window_params = [{transform_indices = @transform_0, window_bounds = array<i64: 9, 128>}, {transform_indices = @transform_1, window_bounds = array<i64: 1, 128>}, {pipeline_mode = #tpu.pipeline_mode<synchronous>, transform_indices = @transform_2, window_bounds = array<i64: 32, 9>}, {pipeline_mode = #tpu.pipeline_mode<synchronous>, transform_indices = @transform_3, window_bounds = array<i64: 32, 1>}, {pipeline_mode = #tpu.pipeline_mode<synchronous>, transform_indices = @transform_4, window_bounds = array<i64: 32, 32>}, {pipeline_mode = #tpu.pipeline_mode<synchronous>, transform_indices = @transform_5, window_bounds = array<i64: 32, 1>}, {transform_indices = @transform_6, window_bounds = array<i64: 32, 128>}]} {
    %c0 = arith.constant 0 : index
    %c0_0 = arith.constant 0 : index
    %0 = vector.load %arg1[%c0, %c0_0] : memref<9x128xf32, #tpu.memory_space<vmem>>, vector<9x128xf32>
    %c0_1 = arith.constant 0 : index
    %c0_2 = arith.constant 0 : index
    %1 = vector.load %arg2[%c0_1, %c0_2] : memref<1x128xf32, #tpu.memory_space<vmem>>, vector<1x128xf32>
    %2 = vector.extract_strided_slice %0 {offsets = [0, 0], sizes = [1, 128], strides = [1, 1]} : vector<9x128xf32> to vector<1x128xf32>
    %3 = vector.extract_strided_slice %0 {offsets = [1, 0], sizes = [1, 128], strides = [1, 1]} : vector<9x128xf32> to vector<1x128xf32>
    %4 = vector.extract_strided_slice %0 {offsets = [2, 0], sizes = [1, 128], strides = [1, 1]} : vector<9x128xf32> to vector<1x128xf32>
    %5 = vector.extract_strided_slice %0 {offsets = [3, 0], sizes = [1, 128], strides = [1, 1]} : vector<9x128xf32> to vector<1x128xf32>
    %6 = vector.extract_strided_slice %0 {offsets = [4, 0], sizes = [1, 128], strides = [1, 1]} : vector<9x128xf32> to vector<1x128xf32>
    %7 = vector.extract_strided_slice %0 {offsets = [5, 0], sizes = [1, 128], strides = [1, 1]} : vector<9x128xf32> to vector<1x128xf32>
    %8 = vector.extract_strided_slice %0 {offsets = [6, 0], sizes = [1, 128], strides = [1, 1]} : vector<9x128xf32> to vector<1x128xf32>
    %9 = vector.extract_strided_slice %0 {offsets = [7, 0], sizes = [1, 128], strides = [1, 1]} : vector<9x128xf32> to vector<1x128xf32>
    %10 = vector.extract_strided_slice %0 {offsets = [8, 0], sizes = [1, 128], strides = [1, 1]} : vector<9x128xf32> to vector<1x128xf32>
    %11 = arith.mulf %3, %7 : vector<1x128xf32>
    %12 = arith.mulf %4, %6 : vector<1x128xf32>
    %13 = arith.subf %11, %12 : vector<1x128xf32>
    %14 = arith.mulf %4, %5 : vector<1x128xf32>
    %15 = arith.mulf %2, %7 : vector<1x128xf32>
    %16 = arith.subf %14, %15 : vector<1x128xf32>
    %17 = arith.mulf %2, %6 : vector<1x128xf32>
    %18 = arith.mulf %3, %5 : vector<1x128xf32>
    %19 = arith.subf %17, %18 : vector<1x128xf32>
    %20 = arith.mulf %13, %13 : vector<1x128xf32>
    %21 = arith.mulf %16, %16 : vector<1x128xf32>
    %22 = arith.addf %20, %21 : vector<1x128xf32>
    %23 = arith.mulf %19, %19 : vector<1x128xf32>
    %24 = arith.addf %22, %23 : vector<1x128xf32>
    %cst = arith.constant 0.000000e+00 : f32
    %25 = vector.broadcast %cst : f32 to vector<1x128xf32>
    %26 = arith.cmpf oeq, %24, %25 : vector<1x128xf32>
    %cst_3 = arith.constant 1.000000e+00 : f32
    %27 = vector.broadcast %cst_3 : f32 to vector<1x128xf32>
    %28 = arith.select %26, %27, %24 : vector<1x128xi1>, vector<1x128xf32>
    %29 = math.rsqrt %28 : vector<1x128xf32>
    %30 = arith.mulf %13, %29 : vector<1x128xf32>
    %31 = arith.mulf %16, %29 : vector<1x128xf32>
    %32 = arith.mulf %19, %29 : vector<1x128xf32>
    %33 = arith.mulf %24, %29 : vector<1x128xf32>
    %34 = arith.addf %2, %5 : vector<1x128xf32>
    %cst_4 = arith.constant 3.000000e+00 : f32
    %35 = vector.broadcast %cst_4 : f32 to vector<1x128xf32>
    %36 = arith.divf %34, %35 : vector<1x128xf32>
    %37 = arith.addf %3, %6 : vector<1x128xf32>
    %cst_5 = arith.constant 3.000000e+00 : f32
    %38 = vector.broadcast %cst_5 : f32 to vector<1x128xf32>
    %39 = arith.divf %37, %38 : vector<1x128xf32>
    %40 = arith.addf %4, %7 : vector<1x128xf32>
    %cst_6 = arith.constant 3.000000e+00 : f32
    %41 = vector.broadcast %cst_6 : f32 to vector<1x128xf32>
    %42 = arith.divf %40, %41 : vector<1x128xf32>
    %43 = arith.subf %2, %5 : vector<1x128xf32>
    %44 = arith.subf %3, %6 : vector<1x128xf32>
    %45 = arith.subf %4, %7 : vector<1x128xf32>
    %46 = arith.mulf %43, %43 : vector<1x128xf32>
    %47 = arith.mulf %44, %44 : vector<1x128xf32>
    %48 = arith.addf %46, %47 : vector<1x128xf32>
    %49 = arith.mulf %45, %45 : vector<1x128xf32>
    %50 = arith.addf %48, %49 : vector<1x128xf32>
    %51 = math.sqrt %50 : vector<1x128xf32>
    %cst_7 = arith.constant 5.000000e-01 : f32
    %52 = vector.broadcast %cst_7 : f32 to vector<1x128xf32>
    %53 = arith.mulf %52, %33 : vector<1x128xf32>
    %54 = arith.mulf %6, %10 : vector<1x128xf32>
    %55 = arith.mulf %7, %9 : vector<1x128xf32>
    %56 = arith.subf %54, %55 : vector<1x128xf32>
    %57 = arith.mulf %7, %8 : vector<1x128xf32>
    %58 = arith.mulf %5, %10 : vector<1x128xf32>
    %59 = arith.subf %57, %58 : vector<1x128xf32>
    %60 = arith.mulf %5, %9 : vector<1x128xf32>
    %61 = arith.mulf %6, %8 : vector<1x128xf32>
    %62 = arith.subf %60, %61 : vector<1x128xf32>
    %63 = arith.mulf %56, %56 : vector<1x128xf32>
    %64 = arith.mulf %59, %59 : vector<1x128xf32>
    %65 = arith.addf %63, %64 : vector<1x128xf32>
    %66 = arith.mulf %62, %62 : vector<1x128xf32>
    %67 = arith.addf %65, %66 : vector<1x128xf32>
    %cst_8 = arith.constant 0.000000e+00 : f32
    %68 = vector.broadcast %cst_8 : f32 to vector<1x128xf32>
    %69 = arith.cmpf oeq, %67, %68 : vector<1x128xf32>
    %cst_9 = arith.constant 1.000000e+00 : f32
    %70 = vector.broadcast %cst_9 : f32 to vector<1x128xf32>
    %71 = arith.select %69, %70, %67 : vector<1x128xi1>, vector<1x128xf32>
    %72 = math.rsqrt %71 : vector<1x128xf32>
    %73 = arith.mulf %56, %72 : vector<1x128xf32>
    %74 = arith.mulf %59, %72 : vector<1x128xf32>
    %75 = arith.mulf %62, %72 : vector<1x128xf32>
    %76 = arith.mulf %67, %72 : vector<1x128xf32>
    %77 = arith.addf %5, %8 : vector<1x128xf32>
    %cst_10 = arith.constant 3.000000e+00 : f32
    %78 = vector.broadcast %cst_10 : f32 to vector<1x128xf32>
    %79 = arith.divf %77, %78 : vector<1x128xf32>
    %80 = arith.addf %6, %9 : vector<1x128xf32>
    %cst_11 = arith.constant 3.000000e+00 : f32
    %81 = vector.broadcast %cst_11 : f32 to vector<1x128xf32>
    %82 = arith.divf %80, %81 : vector<1x128xf32>
    %83 = arith.addf %7, %10 : vector<1x128xf32>
    %cst_12 = arith.constant 3.000000e+00 : f32
    %84 = vector.broadcast %cst_12 : f32 to vector<1x128xf32>
    %85 = arith.divf %83, %84 : vector<1x128xf32>
    %86 = arith.subf %5, %8 : vector<1x128xf32>
    %87 = arith.subf %6, %9 : vector<1x128xf32>
    %88 = arith.subf %7, %10 : vector<1x128xf32>
    %89 = arith.mulf %86, %86 : vector<1x128xf32>
    %90 = arith.mulf %87, %87 : vector<1x128xf32>
    %91 = arith.addf %89, %90 : vector<1x128xf32>
    %92 = arith.mulf %88, %88 : vector<1x128xf32>
    %93 = arith.addf %91, %92 : vector<1x128xf32>
    %94 = math.sqrt %93 : vector<1x128xf32>
    %cst_13 = arith.constant 5.000000e-01 : f32
    %95 = vector.broadcast %cst_13 : f32 to vector<1x128xf32>
    %96 = arith.mulf %95, %76 : vector<1x128xf32>
    %97 = arith.mulf %9, %4 : vector<1x128xf32>
    %98 = arith.mulf %10, %3 : vector<1x128xf32>
    %99 = arith.subf %97, %98 : vector<1x128xf32>
    %100 = arith.mulf %10, %2 : vector<1x128xf32>
    %101 = arith.mulf %8, %4 : vector<1x128xf32>
    %102 = arith.subf %100, %101 : vector<1x128xf32>
    %103 = arith.mulf %8, %3 : vector<1x128xf32>
    %104 = arith.mulf %9, %2 : vector<1x128xf32>
    %105 = arith.subf %103, %104 : vector<1x128xf32>
    %106 = arith.mulf %99, %99 : vector<1x128xf32>
    %107 = arith.mulf %102, %102 : vector<1x128xf32>
    %108 = arith.addf %106, %107 : vector<1x128xf32>
    %109 = arith.mulf %105, %105 : vector<1x128xf32>
    %110 = arith.addf %108, %109 : vector<1x128xf32>
    %cst_14 = arith.constant 0.000000e+00 : f32
    %111 = vector.broadcast %cst_14 : f32 to vector<1x128xf32>
    %112 = arith.cmpf oeq, %110, %111 : vector<1x128xf32>
    %cst_15 = arith.constant 1.000000e+00 : f32
    %113 = vector.broadcast %cst_15 : f32 to vector<1x128xf32>
    %114 = arith.select %112, %113, %110 : vector<1x128xi1>, vector<1x128xf32>
    %115 = math.rsqrt %114 : vector<1x128xf32>
    %116 = arith.mulf %99, %115 : vector<1x128xf32>
    %117 = arith.mulf %102, %115 : vector<1x128xf32>
    %118 = arith.mulf %105, %115 : vector<1x128xf32>
    %119 = arith.mulf %110, %115 : vector<1x128xf32>
    %120 = arith.addf %8, %2 : vector<1x128xf32>
    %cst_16 = arith.constant 3.000000e+00 : f32
    %121 = vector.broadcast %cst_16 : f32 to vector<1x128xf32>
    %122 = arith.divf %120, %121 : vector<1x128xf32>
    %123 = arith.addf %9, %3 : vector<1x128xf32>
    %cst_17 = arith.constant 3.000000e+00 : f32
    %124 = vector.broadcast %cst_17 : f32 to vector<1x128xf32>
    %125 = arith.divf %123, %124 : vector<1x128xf32>
    %126 = arith.addf %10, %4 : vector<1x128xf32>
    %cst_18 = arith.constant 3.000000e+00 : f32
    %127 = vector.broadcast %cst_18 : f32 to vector<1x128xf32>
    %128 = arith.divf %126, %127 : vector<1x128xf32>
    %129 = arith.subf %8, %2 : vector<1x128xf32>
    %130 = arith.subf %9, %3 : vector<1x128xf32>
    %131 = arith.subf %10, %4 : vector<1x128xf32>
    %132 = arith.mulf %129, %129 : vector<1x128xf32>
    %133 = arith.mulf %130, %130 : vector<1x128xf32>
    %134 = arith.addf %132, %133 : vector<1x128xf32>
    %135 = arith.mulf %131, %131 : vector<1x128xf32>
    %136 = arith.addf %134, %135 : vector<1x128xf32>
    %137 = math.sqrt %136 : vector<1x128xf32>
    %cst_19 = arith.constant 5.000000e-01 : f32
    %138 = vector.broadcast %cst_19 : f32 to vector<1x128xf32>
    %139 = arith.mulf %138, %119 : vector<1x128xf32>
    %cst_20 = arith.constant 0.000000e+00 : f32
    %140 = vector.broadcast %cst_20 : f32 to vector<1x128xf32>
    %141 = arith.cmpf ogt, %30, %140 : vector<1x128xf32>
    %cst_21 = arith.constant 1.000000e+00 : f32
    %cst_22 = arith.constant -1.000000e+00 : f32
    %142 = vector.broadcast %cst_21 : f32 to vector<1x128xf32>
    %143 = vector.broadcast %cst_22 : f32 to vector<1x128xf32>
    %144 = arith.select %141, %142, %143 : vector<1x128xi1>, vector<1x128xf32>
    %145 = arith.mulf %144, %1 : vector<1x128xf32>
    %146 = arith.mulf %30, %145 : vector<1x128xf32>
    %147 = arith.mulf %31, %145 : vector<1x128xf32>
    %148 = arith.mulf %32, %145 : vector<1x128xf32>
    %149 = arith.mulf %73, %145 : vector<1x128xf32>
    %150 = arith.mulf %74, %145 : vector<1x128xf32>
    %151 = arith.mulf %75, %145 : vector<1x128xf32>
    %152 = arith.mulf %116, %145 : vector<1x128xf32>
    %153 = arith.mulf %117, %145 : vector<1x128xf32>
    %154 = arith.mulf %118, %145 : vector<1x128xf32>
    %155 = arith.mulf %146, %36 : vector<1x128xf32>
    %156 = arith.mulf %147, %39 : vector<1x128xf32>
    %157 = arith.addf %155, %156 : vector<1x128xf32>
    %158 = arith.mulf %148, %42 : vector<1x128xf32>
    %159 = arith.addf %157, %158 : vector<1x128xf32>
    %cst_23 = arith.constant 0.577350259 : f32
    %160 = vector.broadcast %cst_23 : f32 to vector<1x128xf32>
    %161 = arith.mulf %159, %160 : vector<1x128xf32>
    %162 = arith.mulf %149, %79 : vector<1x128xf32>
    %163 = arith.mulf %150, %82 : vector<1x128xf32>
    %164 = arith.addf %162, %163 : vector<1x128xf32>
    %165 = arith.mulf %151, %85 : vector<1x128xf32>
    %166 = arith.addf %164, %165 : vector<1x128xf32>
    %cst_24 = arith.constant 0.577350259 : f32
    %167 = vector.broadcast %cst_24 : f32 to vector<1x128xf32>
    %168 = arith.mulf %166, %167 : vector<1x128xf32>
    %169 = arith.mulf %152, %122 : vector<1x128xf32>
    %170 = arith.mulf %153, %125 : vector<1x128xf32>
    %171 = arith.addf %169, %170 : vector<1x128xf32>
    %172 = arith.mulf %154, %128 : vector<1x128xf32>
    %173 = arith.addf %171, %172 : vector<1x128xf32>
    %cst_25 = arith.constant 0.577350259 : f32
    %174 = vector.broadcast %cst_25 : f32 to vector<1x128xf32>
    %175 = arith.mulf %173, %174 : vector<1x128xf32>
    %176 = arith.select %69, %152, %149 : vector<1x128xi1>, vector<1x128xf32>
    %177 = arith.select %26, %176, %146 : vector<1x128xi1>, vector<1x128xf32>
    %178 = arith.andi %26, %69 : vector<1x128xi1>
    %179 = arith.andi %178, %112 : vector<1x128xi1>
    %180 = arith.select %179, %146, %177 : vector<1x128xi1>, vector<1x128xf32>
    %181 = arith.select %69, %153, %150 : vector<1x128xi1>, vector<1x128xf32>
    %182 = arith.select %26, %181, %147 : vector<1x128xi1>, vector<1x128xf32>
    %183 = arith.andi %26, %69 : vector<1x128xi1>
    %184 = arith.andi %183, %112 : vector<1x128xi1>
    %185 = arith.select %184, %147, %182 : vector<1x128xi1>, vector<1x128xf32>
    %186 = arith.select %69, %154, %151 : vector<1x128xi1>, vector<1x128xf32>
    %187 = arith.select %26, %186, %148 : vector<1x128xi1>, vector<1x128xf32>
    %188 = arith.andi %26, %69 : vector<1x128xi1>
    %189 = arith.andi %188, %112 : vector<1x128xi1>
    %190 = arith.select %189, %148, %187 : vector<1x128xi1>, vector<1x128xf32>
    %191 = arith.select %69, %122, %79 : vector<1x128xi1>, vector<1x128xf32>
    %192 = arith.select %26, %191, %36 : vector<1x128xi1>, vector<1x128xf32>
    %193 = arith.andi %26, %69 : vector<1x128xi1>
    %194 = arith.andi %193, %112 : vector<1x128xi1>
    %195 = arith.select %194, %36, %192 : vector<1x128xi1>, vector<1x128xf32>
    %196 = arith.select %69, %125, %82 : vector<1x128xi1>, vector<1x128xf32>
    %197 = arith.select %26, %196, %39 : vector<1x128xi1>, vector<1x128xf32>
    %198 = arith.andi %26, %69 : vector<1x128xi1>
    %199 = arith.andi %198, %112 : vector<1x128xi1>
    %200 = arith.select %199, %39, %197 : vector<1x128xi1>, vector<1x128xf32>
    %201 = arith.select %69, %128, %85 : vector<1x128xi1>, vector<1x128xf32>
    %202 = arith.select %26, %201, %42 : vector<1x128xi1>, vector<1x128xf32>
    %203 = arith.andi %26, %69 : vector<1x128xi1>
    %204 = arith.andi %203, %112 : vector<1x128xi1>
    %205 = arith.select %204, %42, %202 : vector<1x128xi1>, vector<1x128xf32>
    %206 = arith.select %69, %175, %168 : vector<1x128xi1>, vector<1x128xf32>
    %207 = arith.select %26, %206, %161 : vector<1x128xi1>, vector<1x128xf32>
    %208 = arith.andi %26, %69 : vector<1x128xi1>
    %209 = arith.andi %208, %112 : vector<1x128xi1>
    %210 = arith.select %209, %161, %207 : vector<1x128xi1>, vector<1x128xf32>
    %211 = arith.select %26, %180, %146 : vector<1x128xi1>, vector<1x128xf32>
    %212 = arith.select %26, %185, %147 : vector<1x128xi1>, vector<1x128xf32>
    %213 = arith.select %26, %190, %148 : vector<1x128xi1>, vector<1x128xf32>
    %214 = arith.select %26, %195, %36 : vector<1x128xi1>, vector<1x128xf32>
    %215 = arith.select %26, %200, %39 : vector<1x128xi1>, vector<1x128xf32>
    %216 = arith.select %26, %205, %42 : vector<1x128xi1>, vector<1x128xf32>
    %217 = arith.select %26, %210, %161 : vector<1x128xi1>, vector<1x128xf32>
    %218 = arith.select %69, %180, %149 : vector<1x128xi1>, vector<1x128xf32>
    %219 = arith.select %69, %185, %150 : vector<1x128xi1>, vector<1x128xf32>
    %220 = arith.select %69, %190, %151 : vector<1x128xi1>, vector<1x128xf32>
    %221 = arith.select %69, %195, %79 : vector<1x128xi1>, vector<1x128xf32>
    %222 = arith.select %69, %200, %82 : vector<1x128xi1>, vector<1x128xf32>
    %223 = arith.select %69, %205, %85 : vector<1x128xi1>, vector<1x128xf32>
    %224 = arith.select %69, %210, %168 : vector<1x128xi1>, vector<1x128xf32>
    %225 = arith.select %112, %180, %152 : vector<1x128xi1>, vector<1x128xf32>
    %226 = arith.select %112, %185, %153 : vector<1x128xi1>, vector<1x128xf32>
    %227 = arith.select %112, %190, %154 : vector<1x128xi1>, vector<1x128xf32>
    %228 = arith.select %112, %195, %122 : vector<1x128xi1>, vector<1x128xf32>
    %229 = arith.select %112, %200, %125 : vector<1x128xi1>, vector<1x128xf32>
    %230 = arith.select %112, %205, %128 : vector<1x128xi1>, vector<1x128xf32>
    %231 = arith.select %112, %210, %175 : vector<1x128xi1>, vector<1x128xf32>
    %c0_26 = arith.constant 0 : index
    %c0_27 = arith.constant 0 : index
    %232 = vector.load %arg8[%c0_26, %c0_27] : memref<9x384xf32, #tpu.memory_space<vmem>>, vector<1x128xf32>
    tpu.vector_store %arg8[%c0_26, %c0_27], %211 {strides = array<i32>} : memref<9x384xf32, #tpu.memory_space<vmem>>, vector<1x128xf32>,
    %c1 = arith.constant 1 : index
    %c0_28 = arith.constant 0 : index
    %233 = vector.load %arg8[%c1, %c0_28] : memref<9x384xf32, #tpu.memory_space<vmem>>, vector<1x128xf32>
    tpu.vector_store %arg8[%c1, %c0_28], %212 {strides = array<i32>} : memref<9x384xf32, #tpu.memory_space<vmem>>, vector<1x128xf32>,
    %c2 = arith.constant 2 : index
    %c0_29 = arith.constant 0 : index
    %234 = vector.load %arg8[%c2, %c0_29] : memref<9x384xf32, #tpu.memory_space<vmem>>, vector<1x128xf32>
    tpu.vector_store %arg8[%c2, %c0_29], %213 {strides = array<i32>} : memref<9x384xf32, #tpu.memory_space<vmem>>, vector<1x128xf32>,
    %c3 = arith.constant 3 : index
    %c0_30 = arith.constant 0 : index
    %235 = vector.load %arg8[%c3, %c0_30] : memref<9x384xf32, #tpu.memory_space<vmem>>, vector<1x128xf32>
    tpu.vector_store %arg8[%c3, %c0_30], %217 {strides = array<i32>} : memref<9x384xf32, #tpu.memory_space<vmem>>, vector<1x128xf32>,
    %c4 = arith.constant 4 : index
    %c0_31 = arith.constant 0 : index
    %236 = vector.load %arg8[%c4, %c0_31] : memref<9x384xf32, #tpu.memory_space<vmem>>, vector<1x128xf32>
    tpu.vector_store %arg8[%c4, %c0_31], %214 {strides = array<i32>} : memref<9x384xf32, #tpu.memory_space<vmem>>, vector<1x128xf32>,
    %c5 = arith.constant 5 : index
    %c0_32 = arith.constant 0 : index
    %237 = vector.load %arg8[%c5, %c0_32] : memref<9x384xf32, #tpu.memory_space<vmem>>, vector<1x128xf32>
    tpu.vector_store %arg8[%c5, %c0_32], %215 {strides = array<i32>} : memref<9x384xf32, #tpu.memory_space<vmem>>, vector<1x128xf32>,
    %c6 = arith.constant 6 : index
    %c0_33 = arith.constant 0 : index
    %238 = vector.load %arg8[%c6, %c0_33] : memref<9x384xf32, #tpu.memory_space<vmem>>, vector<1x128xf32>
    tpu.vector_store %arg8[%c6, %c0_33], %216 {strides = array<i32>} : memref<9x384xf32, #tpu.memory_space<vmem>>, vector<1x128xf32>,
    %c7 = arith.constant 7 : index
    %c0_34 = arith.constant 0 : index
    %239 = vector.load %arg8[%c7, %c0_34] : memref<9x384xf32, #tpu.memory_space<vmem>>, vector<1x128xf32>
    tpu.vector_store %arg8[%c7, %c0_34], %51 {strides = array<i32>} : memref<9x384xf32, #tpu.memory_space<vmem>>, vector<1x128xf32>,
    %c8 = arith.constant 8 : index
    %c0_35 = arith.constant 0 : index
    %240 = vector.load %arg8[%c8, %c0_35] : memref<9x384xf32, #tpu.memory_space<vmem>>, vector<1x128xf32>
    tpu.vector_store %arg8[%c8, %c0_35], %53 {strides = array<i32>} : memref<9x384xf32, #tpu.memory_space<vmem>>, vector<1x128xf32>,
    %c0_36 = arith.constant 0 : index
    %c128 = arith.constant 128 : index
    %241 = vector.load %arg8[%c0_36, %c128] : memref<9x384xf32, #tpu.memory_space<vmem>>, vector<1x128xf32>
    tpu.vector_store %arg8[%c0_36, %c128], %218 {strides = array<i32>} : memref<9x384xf32, #tpu.memory_space<vmem>>, vector<1x128xf32>,
    %c1_37 = arith.constant 1 : index
    %c128_38 = arith.constant 128 : index
    %242 = vector.load %arg8[%c1_37, %c128_38] : memref<9x384xf32, #tpu.memory_space<vmem>>, vector<1x128xf32>
    tpu.vector_store %arg8[%c1_37, %c128_38], %219 {strides = array<i32>} : memref<9x384xf32, #tpu.memory_space<vmem>>, vector<1x128xf32>,
    %c2_39 = arith.constant 2 : index
    %c128_40 = arith.constant 128 : index
    %243 = vector.load %arg8[%c2_39, %c128_40] : memref<9x384xf32, #tpu.memory_space<vmem>>, vector<1x128xf32>
    tpu.vector_store %arg8[%c2_39, %c128_40], %220 {strides = array<i32>} : memref<9x384xf32, #tpu.memory_space<vmem>>, vector<1x128xf32>,
    %c3_41 = arith.constant 3 : index
    %c128_42 = arith.constant 128 : index
    %244 = vector.load %arg8[%c3_41, %c128_42] : memref<9x384xf32, #tpu.memory_space<vmem>>, vector<1x128xf32>
    tpu.vector_store %arg8[%c3_41, %c128_42], %224 {strides = array<i32>} : memref<9x384xf32, #tpu.memory_space<vmem>>, vector<1x128xf32>,
    %c4_43 = arith.constant 4 : index
    %c128_44 = arith.constant 128 : index
    %245 = vector.load %arg8[%c4_43, %c128_44] : memref<9x384xf32, #tpu.memory_space<vmem>>, vector<1x128xf32>
    tpu.vector_store %arg8[%c4_43, %c128_44], %221 {strides = array<i32>} : memref<9x384xf32, #tpu.memory_space<vmem>>, vector<1x128xf32>,
    %c5_45 = arith.constant 5 : index
    %c128_46 = arith.constant 128 : index
    %246 = vector.load %arg8[%c5_45, %c128_46] : memref<9x384xf32, #tpu.memory_space<vmem>>, vector<1x128xf32>
    tpu.vector_store %arg8[%c5_45, %c128_46], %222 {strides = array<i32>} : memref<9x384xf32, #tpu.memory_space<vmem>>, vector<1x128xf32>,
    %c6_47 = arith.constant 6 : index
    %c128_48 = arith.constant 128 : index
    %247 = vector.load %arg8[%c6_47, %c128_48] : memref<9x384xf32, #tpu.memory_space<vmem>>, vector<1x128xf32>
    tpu.vector_store %arg8[%c6_47, %c128_48], %223 {strides = array<i32>} : memref<9x384xf32, #tpu.memory_space<vmem>>, vector<1x128xf32>,
    %c7_49 = arith.constant 7 : index
    %c128_50 = arith.constant 128 : index
    %248 = vector.load %arg8[%c7_49, %c128_50] : memref<9x384xf32, #tpu.memory_space<vmem>>, vector<1x128xf32>
    tpu.vector_store %arg8[%c7_49, %c128_50], %94 {strides = array<i32>} : memref<9x384xf32, #tpu.memory_space<vmem>>, vector<1x128xf32>,
    %c8_51 = arith.constant 8 : index
    %c128_52 = arith.constant 128 : index
    %249 = vector.load %arg8[%c8_51, %c128_52] : memref<9x384xf32, #tpu.memory_space<vmem>>, vector<1x128xf32>
    tpu.vector_store %arg8[%c8_51, %c128_52], %96 {strides = array<i32>} : memref<9x384xf32, #tpu.memory_space<vmem>>, vector<1x128xf32>,
    %c0_53 = arith.constant 0 : index
    %c256 = arith.constant 256 : index
    %250 = vector.load %arg8[%c0_53, %c256] : memref<9x384xf32, #tpu.memory_space<vmem>>, vector<1x128xf32>
    tpu.vector_store %arg8[%c0_53, %c256], %225 {strides = array<i32>} : memref<9x384xf32, #tpu.memory_space<vmem>>, vector<1x128xf32>,
    %c1_54 = arith.constant 1 : index
    %c256_55 = arith.constant 256 : index
    %251 = vector.load %arg8[%c1_54, %c256_55] : memref<9x384xf32, #tpu.memory_space<vmem>>, vector<1x128xf32>
    tpu.vector_store %arg8[%c1_54, %c256_55], %226 {strides = array<i32>} : memref<9x384xf32, #tpu.memory_space<vmem>>, vector<1x128xf32>,
    %c2_56 = arith.constant 2 : index
    %c256_57 = arith.constant 256 : index
    %252 = vector.load %arg8[%c2_56, %c256_57] : memref<9x384xf32, #tpu.memory_space<vmem>>, vector<1x128xf32>
    tpu.vector_store %arg8[%c2_56, %c256_57], %227 {strides = array<i32>} : memref<9x384xf32, #tpu.memory_space<vmem>>, vector<1x128xf32>,
    %c3_58 = arith.constant 3 : index
    %c256_59 = arith.constant 256 : index
    %253 = vector.load %arg8[%c3_58, %c256_59] : memref<9x384xf32, #tpu.memory_space<vmem>>, vector<1x128xf32>
    tpu.vector_store %arg8[%c3_58, %c256_59], %231 {strides = array<i32>} : memref<9x384xf32, #tpu.memory_space<vmem>>, vector<1x128xf32>,
    %c4_60 = arith.constant 4 : index
    %c256_61 = arith.constant 256 : index
    %254 = vector.load %arg8[%c4_60, %c256_61] : memref<9x384xf32, #tpu.memory_space<vmem>>, vector<1x128xf32>
    tpu.vector_store %arg8[%c4_60, %c256_61], %228 {strides = array<i32>} : memref<9x384xf32, #tpu.memory_space<vmem>>, vector<1x128xf32>,
    %c5_62 = arith.constant 5 : index
    %c256_63 = arith.constant 256 : index
    %255 = vector.load %arg8[%c5_62, %c256_63] : memref<9x384xf32, #tpu.memory_space<vmem>>, vector<1x128xf32>
    tpu.vector_store %arg8[%c5_62, %c256_63], %229 {strides = array<i32>} : memref<9x384xf32, #tpu.memory_space<vmem>>, vector<1x128xf32>,
    %c6_64 = arith.constant 6 : index
    %c256_65 = arith.constant 256 : index
    %256 = vector.load %arg8[%c6_64, %c256_65] : memref<9x384xf32, #tpu.memory_space<vmem>>, vector<1x128xf32>
    tpu.vector_store %arg8[%c6_64, %c256_65], %230 {strides = array<i32>} : memref<9x384xf32, #tpu.memory_space<vmem>>, vector<1x128xf32>,
    %c7_66 = arith.constant 7 : index
    %c256_67 = arith.constant 256 : index
    %257 = vector.load %arg8[%c7_66, %c256_67] : memref<9x384xf32, #tpu.memory_space<vmem>>, vector<1x128xf32>
    tpu.vector_store %arg8[%c7_66, %c256_67], %137 {strides = array<i32>} : memref<9x384xf32, #tpu.memory_space<vmem>>, vector<1x128xf32>,
    %c8_68 = arith.constant 8 : index
    %c256_69 = arith.constant 256 : index
    %258 = vector.load %arg8[%c8_68, %c256_69] : memref<9x384xf32, #tpu.memory_space<vmem>>, vector<1x128xf32>
    tpu.vector_store %arg8[%c8_68, %c256_69], %139 {strides = array<i32>} : memref<9x384xf32, #tpu.memory_space<vmem>>, vector<1x128xf32>,
    %c0_70 = arith.constant 0 : index
    %c0_71 = arith.constant 0 : index
    %259 = vector.load %arg8[%c0_70, %c0_71] : memref<9x384xf32, #tpu.memory_space<vmem>>, vector<9x384xf32>
    %260 = arith.truncf %259 : vector<9x384xf32> to vector<9x384xbf16>
    %c0_72 = arith.constant 0 : index
    %c0_73 = arith.constant 0 : index
    %261 = vector.load %arg3[%c0_72, %c0_73] : memref<32x9xbf16, #tpu.memory_space<vmem>>, vector<32x9xbf16>
    %cst_74 = arith.constant dense<0.000000e+00> : vector<32x384xf32>
    %262 = tpu.matmul %261, %260, %cst_74 {dimension_numbers = #tpu.dot_dimension_numbers<[1], [0], [0], [1], [0, 0, 1, 1], [], []>} : vector<32x9xbf16>, vector<9x384xbf16>, vector<32x384xf32> -> vector<32x384xf32>
    %c0_75 = arith.constant 0 : index
    %c0_76 = arith.constant 0 : index
    %263 = vector.load %arg4[%c0_75, %c0_76] : memref<32x1xf32, #tpu.memory_space<vmem>>, vector<32x1xf32>
    %264 = vector.broadcast %263 : vector<32x1xf32> to vector<32x384xf32>
    %265 = arith.addf %262, %264 : vector<32x384xf32>
    %cst_77 = arith.constant 0.000000e+00 : f32
    %266 = vector.broadcast %cst_77 : f32 to vector<32x384xf32>
    %267 = arith.maximumf %265, %266 : vector<32x384xf32>
    %c0_78 = arith.constant 0 : index
    %c0_79 = arith.constant 0 : index
    %268 = vector.load %arg5[%c0_78, %c0_79] : memref<32x32xbf16, #tpu.memory_space<vmem>>, vector<32x32xbf16>
    %269 = arith.truncf %267 : vector<32x384xf32> to vector<32x384xbf16>
    %cst_80 = arith.constant dense<0.000000e+00> : vector<32x384xf32>
    %270 = tpu.matmul %268, %269, %cst_80 {dimension_numbers = #tpu.dot_dimension_numbers<[1], [0], [0], [1], [0, 0, 1, 1], [], []>} : vector<32x32xbf16>, vector<32x384xbf16>, vector<32x384xf32> -> vector<32x384xf32>
    %271 = vector.extract_strided_slice %270 {offsets = [0, 0], sizes = [32, 128], strides = [1, 1]} : vector<32x384xf32> to vector<32x128xf32>
    %272 = vector.extract_strided_slice %270 {offsets = [0, 128], sizes = [32, 128], strides = [1, 1]} : vector<32x384xf32> to vector<32x128xf32>
    %273 = arith.addf %271, %272 : vector<32x128xf32>
    %274 = vector.extract_strided_slice %270 {offsets = [0, 256], sizes = [32, 128], strides = [1, 1]} : vector<32x384xf32> to vector<32x128xf32>
    %275 = arith.addf %273, %274 : vector<32x128xf32>
    %c0_81 = arith.constant 0 : index
    %c0_82 = arith.constant 0 : index
    %276 = vector.load %arg6[%c0_81, %c0_82] : memref<32x1xf32, #tpu.memory_space<vmem>>, vector<32x1xf32>
    %cst_83 = arith.constant 3.000000e+00 : f32
    %277 = vector.broadcast %cst_83 : f32 to vector<32x1xf32>
    %278 = arith.mulf %277, %276 : vector<32x1xf32>
    %279 = vector.broadcast %278 : vector<32x1xf32> to vector<32x128xf32>
    %280 = arith.addf %275, %279 : vector<32x128xf32>
    %c0_84 = arith.constant 0 : index
    %c0_85 = arith.constant 0 : index
    %281 = vector.load %arg7[%c0_84, %c0_85] : memref<32x128xf32, #tpu.memory_space<vmem>>, vector<32x128xf32>
    tpu.vector_store %arg7[%c0_84, %c0_85], %280 {strides = array<i32>} : memref<32x128xf32, #tpu.memory_space<vmem>>, vector<32x128xf32>,
    return
  }
  func.func @transform_0(%arg0: i32) -> (i32, i32) {
    %c0_i32 = arith.constant 0 : i32
    %c0_i32_0 = arith.constant 0 : i32
    return %c0_i32, %arg0 : i32, i32
  }
  func.func @transform_1(%arg0: i32) -> (i32, i32) {
    %c0_i32 = arith.constant 0 : i32
    %c0_i32_0 = arith.constant 0 : i32
    return %c0_i32, %arg0 : i32, i32
  }
  func.func @transform_2(%arg0: i32) -> (i32, i32) {
    %c0_i32 = arith.constant 0 : i32
    %c0_i32_0 = arith.constant 0 : i32
    %c0_i32_1 = arith.constant 0 : i32
    return %c0_i32, %c0_i32_0 : i32, i32
  }
  func.func @transform_3(%arg0: i32) -> (i32, i32) {
    %c0_i32 = arith.constant 0 : i32
    %c0_i32_0 = arith.constant 0 : i32
    %c0_i32_1 = arith.constant 0 : i32
    return %c0_i32, %c0_i32_0 : i32, i32
  }
  func.func @transform_4(%arg0: i32) -> (i32, i32) {
    %c0_i32 = arith.constant 0 : i32
    %c0_i32_0 = arith.constant 0 : i32
    %c0_i32_1 = arith.constant 0 : i32
    return %c0_i32, %c0_i32_0 : i32, i32
  }
  func.func @transform_5(%arg0: i32) -> (i32, i32) {
    %c0_i32 = arith.constant 0 : i32
    %c0_i32_0 = arith.constant 0 : i32
    %c0_i32_1 = arith.constant 0 : i32
    return %c0_i32, %c0_i32_0 : i32, i32
  }
  func.func @transform_6(%arg0: i32) -> (i32, i32) {
    %c0_i32 = arith.constant 0 : i32
    %c0_i32_0 = arith.constant 0 : i32
    return %c0_i32, %arg0 : i32, i32
  }
}

</mosaic_0001>

<bundles_post_ra>
// kernel: custom-call.2
= control target key start
LH: loop header
LB: loop body
LE: loop exit
PB: predicated region body
PF: predicated region fallthrough
CT: control target
= control target key end

     0   :  { %s6_s0 = inlined_call_operand.vmem [shape: u32[64], index: 0, kind: output, shape index: {}]  }

// kernel: sfe_forward.1
= control target key start
LH: loop header
LB: loop body
LE: loop exit
PB: predicated region body
PF: predicated region fallthrough
CT: control target
= control target key end

     0   :  { %v950_v2 = vmov 0   ;;  %vm584_vm9 = vcmask 72704   ;;  %vm591_vm13 = vcmask 1043456   ;;  %vm592_vm14 = vcmask 1044480   ;;  %s1417_s0 = inlined_call_operand.vmem [shape: f32[9,128], index: 0, kind: input, shape index: {}]   ;;  %s1418_s2 = inlined_call_operand.vmem [shape: bf16[32,9], index: 2, kind: input, shape index: {}]   ;;  %s1419_s3 = inlined_call_operand.vmem [shape: f32[32,1], index: 3, kind: input, shape index: {}]   ;;  %s1420_s5 = inlined_call_operand.vmem [shape: f32[32,1], index: 5, kind: input, shape index: {}]   ;;  %s1421_s1 = inlined_call_operand.vmem [shape: f32[1,128], index: 1, kind: input, shape index: {}]   ;;  %s1422_s4 = inlined_call_operand.vmem [shape: bf16[32,32], index: 4, kind: input, shape index: {}]   ;;  %s1423_s6 = inlined_call_operand.vmem [shape: f32[32,128], index: 6, kind: output, shape index: {}]  }
   0x1   :  { %v991_v0 = vld [vmem:[%s1417_s0] sm:$0xff]  ;;  %v996_v1 = vld [vmem:[%s1417_s0 + $0x8] sm:$0x1]  ;;  %636 = vmatprep.mubr.bf16.mxu0 %v950_v2  ;;  %932 = vset.pattern.permute.xlu0 %v950_v2  ;;  %v552_v18 = vld [vmem:[%s1419_s3 + $0x10] sm:$0xff] }
   0x2   :  { %v28_v3 = vrot.slane %v991_v0, 4  ;;  %v1002_v4 = vrot.slane %v991_v0, 2  ;;  %v38_v5 = vrot.slane %v991_v0, 1  ;;  %v41_v6 = vrot.slane %v991_v0, 5  ;;  %933 = vset.pattern.permute.xlu1 %v950_v2  ;;  %v550_v19 = vld [vmem:[%s1419_s3] sm:$0xff]  ;;  %566 = vperm.xlu0 %932, %v552_v18   ;;  %v553_v25 = vld [vmem:[%s1419_s3 + $0x18] sm:$0xff] }
   0x3   :  { %v70_v7 = vrot.slane %v991_v0, 3  ;;  %v93_v8 = vrot.slane %v996_v1, 4  ;;  %v97_v9 = vrot.slane %v996_v1, 5  ;;  %v123_v10 = vrot.slane %v996_v1, 3  ;;  %556 = vperm.xlu1 %933, %v550_v19   ;;  %v551_v30 = vld [vmem:[%s1419_s3 + $0x8] sm:$0xff] }
   0x4   :  { %v30_v11 = vmul.f32 %v28_v3, %v991_v0  ;;  %v33_v12 = vmul.f32 %v1002_v4, %v991_v0  ;;  %v40_v13 = vmul.f32 %v38_v5, %v991_v0  ;;  %v43_v14 = vmul.f32 %v41_v6, %v991_v0 }
   0x5   :  { %v75_v15 = vsub.f32 %v991_v0, %v70_v7  ;;  %v95_v16 = vmul.f32 %v93_v8, %v991_v0  ;;  %v99_v17 = vmul.f32 %v97_v9, %v991_v0  ;;  %v127_v22 = vsub.f32 %v991_v0, %v123_v10 }
   0x6   :  { %v35_v20 = vrot.slane %v33_v12, 1  ;;  %v45_v21 = vrot.slane %v43_v14, 6  ;;  %v72_v28 = vadd.f32 %v70_v7, %v991_v0  ;;  %v141_v34 = vmul.f32 %v70_v7, %v991_v0  ;;  %571 = vperm.xlu0 %932, %v553_v25  }
   0x7   :  { %v76_v23 = vmul.f32 %v75_v15, %v75_v15  ;;  %v101_v24 = vrot.slane %v99_v17, 6  ;;  %v128_v33 = vmul.f32 %v127_v22, %v127_v22  ;;  %v142_v38 = vmul.f32 %v38_v5, %v996_v1  ;;  %561 = vperm.xlu1 %933, %v551_v30  }
   0x8   :  { %v1029_v26 = vsub.f32 %v30_v11, %v35_v20  ;;  %v1031_v27 = vsub.f32 %v40_v13, %v45_v21  ;;  %v1034_v29 = vsub.f32 %v95_v16, %v35_v20  ;;  %v147_v42 = vmul.f32 %v996_v1, %v991_v0 }
   0x9   :  { %v78_v31 = vrot.slane %v76_v23, 1  ;;  %v1039_v32 = vsub.f32 %v40_v13, %v101_v24  ;;  %v130_v41 = vrot.slane %v128_v33, 2  ;;  %v144_v45 = vrot.slane %v142_v38, 1 }
   0xa   :  { %v48_v35 = vmul.f32 %v1029_v26, %v1029_v26  ;;  %v49_v36 = vmul.f32 %v1031_v27, %v1031_v27  ;;  %v104_v37 = vmul.f32 %v1034_v29, %v1034_v29  ;;  %v149_v46 = vrot.slane %v30_v11, 6 }
   0xb   :  { %v80_v39 = vadd.f32 %v78_v31, %v76_v23  ;;  %v105_v40 = vmul.f32 %v1039_v32, %v1039_v32  ;;  %v125_v48 = vadd.f32 %v123_v10, %v991_v0  ;;  %v153_v50 = vrot.slane %v40_v13, 1 }
   0xc   :  { %v51_v43 = vrot.slane %v49_v36, 1  ;;  %v55_v44 = vrot.slane %v48_v35, 7  ;;  %v81_v52 = vrot.slane %v76_v23, 2  ;;  %v1056_v53 = vsub.f32 %v141_v34, %v144_v45 }
   0xd   :  { %v107_v47 = vrot.slane %v105_v40, 1  ;;  %v1054_v49 = vadd.f32 %v130_v41, %v80_v39  ;;  %v1058_v54 = vsub.f32 %v147_v42, %v149_v46  ;;  %v179_v56 = vadd.f32 %v1002_v4, %v991_v0  ;;  %v855_v40 = vld [vmem:[%s1420_s5] sm:$0xff] }
   0xe   :  { %v53_v51 = vadd.f32 %v51_v43, %v48_v35  ;;  %v1065_v58 = vmul.f32 0.33333334, %v72_v28  ;;  %v1067_v59 = vsub.f32 %v141_v34, %v153_v50  ;;  %v156_v61 = vmul.f32 %v1056_v53, %v1056_v53  ;;  %v1159_v50 = vld [vmem:[%s1418_s2] sm:$0xff]  }
   0xf   :  { %v109_v55 = vadd.f32 %v107_v47, %v104_v37  ;;  %938 = vrsqrt.f32 %v1054_v49  ;;  %v157_v62 = vmul.f32 %v1058_v54, %v1058_v54  ;;  %v181_v63 = vadd.f32 %v1002_v4, %v996_v1  ;;  %917 = vmatprep.mubr.msk.bf16.mxu1 %vm584_vm9, %v1159_v50 }
  0x10   :  { %v1063_v57 = vadd.f32 %v55_v44, %v53_v51  ;;  %v1078_v3 = vadd.f32 %v81_v52, %v80_v39  ;;  %v1080_v5 = vmul.f32 0.33333334, %v125_v48  ;;  %v162_v6 = vmul.f32 %v1067_v59, %v1067_v59 }
  0x11   :  { %v1069_v60 = vadd.f32 %v109_v55, %v55_v44  ;;  %v159_v8 = vrot.slane %v157_v62, 1  ;;  %v1088_v9 = vmul.f32 0.33333334, %v179_v56  ;;  %vm135_vm2 = vcmp.eq.f32.partialorder %v1054_v49, inf }
  0x12   :  { %vm58_vm0 = vcmp.eq.f32.partialorder %v1063_v57, 0.0  ;;  %v164_v11 = vrot.slane %v162_v6, 7  ;;  %v1094_v12 = vmul.f32 0.33333334, %v181_v63  ;;  %vm137_vm3 = vcmp.eq.f32.partialorder %v1054_v49, 0.0 }
  0x13   :  { %v59_v7 = vsel %vm58_vm0, 1.0, %v1063_v57  ;;  %vm111_vm1 = vcmp.eq.f32.partialorder %v1069_v60, 0.0  ;;  %v138_v13 = vand.u32 2147483648, %v1054_v49  ;;  %v161_v14 = vadd.f32 %v159_v8, %v156_v61 }
  0x14   :  { %940 = vrsqrt.f32 %v59_v7  ;;  %v112_v10 = vsel %vm111_vm1, 1.0, %v1069_v60  ;;  %v1099_v15 = vrot.slane %v1065_v58, 7  ;;  %v294_v16 = vsel %vm111_vm1, 1, %v950_v2 }
  0x15   :  { %942 = vrsqrt.f32 %v112_v10  ;;  %v333_v17 = vrot.slane %v1088_v9, 2  ;;  %v341_v18 = vrot.slane %v1088_v9, 3  ;;  %v349_v19 = vrot.slane %v1094_v12, 4 }
  0x16   :  { %v1107_v20 = vadd.f32 %v164_v11, %v161_v14  ;;  %v245_v21 = vrot.slane %v1065_v58, 2  ;;  %v295_v22 = vrot.slane %v294_v16, 3  ;;  %v351_v23 = vrot.slane %v1080_v5, 1 }
  0x17   :  { %v260_v24 = vrot.slane %v1080_v5, 2  ;;  %v335_v25 = vsel %vm111_vm1, %v333_v17, %v1099_v15  ;;  %v343_v28 = vsel %vm111_vm1, %v341_v18, %v1065_v58  ;;  %944 = vrsqrt.f32 %v1078_v3 }
  0x18   :  { %vm167_vm4 = vcmp.eq.f32.partialorder %v1107_v20, 0.0  ;;  %vm296_vm5 = vcmp.ne.s32.totalorder %v295_v22, 0  ;;  %v337_v30 = vrot.slane %v335_v25, 3  ;;  %v345_v31 = vrot.slane %v343_v28, 3  ;;  %v895_v22 = vld [vmem:[%s1421_s1] ss:$0 sm:$0xff] }
  0x19   :  { %v168_v33 = vsel %vm167_vm4, 1.0, %v1107_v20  ;;  %v298_v34 = vsel %vm167_vm4, 1, %v950_v2  ;;  %v353_v35 = vsel %vm111_vm1, %v349_v19, %v351_v23  ;;  %v357_v36 = vrot.slane %v1065_v58, 1  ;;  %vm297_vm6 = vmand %vm58_vm0, %vm296_vm5 }
  0x1a   :  { %946 = vrsqrt.f32 %v168_v33  ;;  %v1132_v37 = vrot.slane %v1088_v9, 7  ;;  %v278_v38 = vrot.slane %v1094_v12, 2  ;;  %v299_v39 = vrot.slane %v298_v34, 6 }
  0x1b   :  { %v339_v42 = vsel %vm58_vm0, %v337_v30, %v1099_v15  ;;  %v347_v43 = vsel %vm58_vm0, %v345_v31, %v1065_v58  ;;  %v355_v44 = vrot.slane %v353_v35, 3  ;;  %v89_v45 = vand.u32 2147483648, %v1078_v3 }
  0x1c   :  { %v939_v41 = vpop.eup %938  ;;  %vm300_vm7 = vcmp.ne.s32.totalorder %v299_v39, 0  ;;  %v1150_v47 = vsub.f32 %v991_v0, %v1002_v4  ;;  %v1154_v48 = vsub.f32 %v996_v1, %v1002_v4  ;;  %v426_v55 = vrot.slane %v1094_v12, 1 }
  0x1d   :  { %v134_v46 = vmul.f32 %v939_v41, %v1054_v49  ;;  %vm1161_vm8 = vmand %vm297_vm6, %vm300_vm7  ;;  %v359_v52 = vsel %vm58_vm0, %v355_v44, %v357_v36  ;;  %v859_v0 = vmul.f32 3.0, %v855_v40  ;;  %v951_v41 = vmov -1.0  }
  0x1e   :  { %v1174_v4 = vsel %vm1161_vm8, %v1099_v15, %v339_v42  ;;  %v1179_v56 = vsel %vm1161_vm8, %v1065_v58, %v347_v43  ;;  %v1183_v61 = vsel %vm1161_vm8, %v357_v36, %v359_v52  ;;  %vm86_vm11 = vcmp.eq.f32.partialorder %v1078_v3, inf }
  0x1f   :  { %v136_v1 = vsel %vm135_vm2, %v1054_v49, %v134_v46  ;;  %v390_v63 = vrot.slane %v1174_v4, 5  ;;  %v394_v6 = vrot.slane %v1179_v56, 5  ;;  %v398_v7 = vrot.slane %v1183_v61, 5  ;;  %865 = vperm.xlu0 %932, %v859_v0  }
  0x20   :  { %v139_v62 = vsel %vm137_vm3, %v138_v13, %v136_v1  ;;  %v1196_v11 = vsel %vm58_vm0, %v1174_v4, %v1099_v15  ;;  %v1202_v49 = vsel %vm58_vm0, %v1179_v56, %v1065_v58  ;;  %v1207_v13 = vsel %vm58_vm0, %v1183_v61, %v357_v36 }
  0x21   :  { %v941_v8 = vpop.eup %940  ;;  %v494_v10 = vrot.slane %v139_v62, 3  ;;  %v392_v19 = vsel %vm111_vm1, %v390_v63, %v1099_v15  ;;  %v396_v35 = vsel %vm111_vm1, %v394_v6, %v1065_v58  ;;  %vm88_vm12 = vcmp.eq.f32.partialorder %v1078_v3, 0.0 }
  0x22   :  { %v943_v14 = vpop.eup %942  ;;  %v61_v16 = vmul.f32 %v941_v8, %v1029_v26  ;;  %v63_v17 = vrot.slane %v941_v8, 7  ;;  %v66_v18 = vrot.slane %v941_v8, 1  ;;  %v482_v44 = vrot.slane %v392_v19, 4 }
  0x23   :  { %v114_v25 = vmul.f32 %v943_v14, %v1034_v29  ;;  %v116_v28 = vrot.slane %v943_v14, 7  ;;  %v119_v30 = vrot.slane %v943_v14, 1  ;;  %v122_v31 = vmul.f32 %v943_v14, %v1069_v60  ;;  %496 = vst [vmem:[#allocation2 + $0xf] sm:$0x1] %v494_v10 }
  0x24   :  { %v65_v33 = vmul.f32 %v63_v17, %v1031_v27  ;;  %v68_v34 = vmul.f32 %v66_v18, %v1029_v26  ;;  %vm203_vm10 = vcmp.gt.f32.partialorder %v61_v16, 0.0  ;;  %v945_v36 = vpop.eup %944  ;;  %v400_v27 = vsel %vm111_vm1, %v398_v7, %v351_v23  ;;  %484 = vst [vmem:[#allocation2 + $0xc] sm:$0x1] %v482_v44 }
  0x25   :  { %v118_v39 = vmul.f32 %v116_v28, %v1039_v32  ;;  %v121_v40 = vmul.f32 %v119_v30, %v1029_v26  ;;  %v140_v29 = vmul.f32 0.5, %v122_v31  ;;  %v204_v42 = vsel %vm203_vm10, 1.0, %v951_v41 }
  0x26   :  { %v211_v43 = vmul.f32 %v895_v22, %v204_v42  ;;  %v486_v46 = vrot.slane %v396_v35, 4  ;;  %v490_v52 = vrot.slane %v400_v27, 4  ;;  %v1230_v1 = vmul.f32 %v941_v8, %v1063_v57 }
  0x27   :  { %v498_v0 = vrot.slane %v140_v29, 4  ;;  %v1233_v32 = vmul.f32 %v945_v36, %v1078_v3  ;;  %v1235_v26 = vpop.eup %946  ;;  %v424_v60 = vrot.slane %v1183_v61, 2  ;;  %v857_v61 = vld [vmem:[%s1420_s5 + $0x10] sm:$0xff] }
  0x28   :  { %v1237_v62 = vmul.f32 %v211_v43, %v61_v16  ;;  %v214_v63 = vrot.slane %v211_v43, 7  ;;  %v217_v6 = vrot.slane %v211_v43, 1  ;;  %v220_v10 = vrot.slane %v211_v43, 5  ;;  %488 = vst [vmem:[#allocation2 + $0xd] sm:$0x1] %v486_v46 }
  0x29   :  { %v170_v23 = vmul.f32 %v1235_v26, %v1056_v53  ;;  %v172_v7 = vrot.slane %v1235_v26, 7  ;;  %v175_v8 = vrot.slane %v1235_v26, 1  ;;  %v223_v14 = vrot.slane %v211_v43, 4  ;;  %492 = vst [vmem:[#allocation2 + $0xe] sm:$0x1] %v490_v52 }
  0x2a   :  { %500 = vst [vmem:[#allocation2 + $0x20] sm:$0x1] %v498_v0  ;;  %v216_v17 = vmul.f32 %v214_v63, %v65_v33  ;;  %v219_v18 = vmul.f32 %v217_v6, %v68_v34  ;;  %v222_v19 = vmul.f32 %v220_v10, %v114_v25  ;;  %v226_v16 = vrot.slane %v211_v43, 6 }
  0x2b   :  { %v174_v22 = vmul.f32 %v172_v7, %v1058_v54  ;;  %v177_v28 = vmul.f32 %v175_v8, %v1067_v59  ;;  %v1245_v30 = vmul.f32 %v223_v14, %v118_v39  ;;  %v229_v31 = vrot.slane %v211_v43, 2 }
  0x2c   :  { %v1248_v53 = vmul.f32 %v226_v16, %v121_v40  ;;  %v233_v35 = vrot.slane %v211_v43, 3  ;;  %v239_v36 = vmul.f32 %v1099_v15, %v1237_v62  ;;  %v240_v33 = vmul.f32 %v1099_v15, %v216_v17 }
  0x2d   :  { %v1254_v25 = vmul.f32 %v229_v31, %v170_v23  ;;  %v1256_v54 = vmul.f32 %v217_v6, %v174_v22  ;;  %v247_v59 = vmul.f32 %v245_v21, %v219_v18  ;;  %v253_v34 = vmul.f32 %v1099_v15, %v222_v19 }
  0x2e   :  { %v1261_v39 = vmul.f32 %v233_v35, %v177_v28  ;;  %v242_v40 = vrot.slane %v240_v33, 1  ;;  %v254_v29 = vmul.f32 %v1099_v15, %v1245_v30  ;;  %v262_v41 = vmul.f32 %v260_v24, %v1248_v53 }
  0x2f   :  { %v249_v42 = vrot.slane %v247_v59, 7  ;;  %v271_v43 = vmul.f32 %v1132_v37, %v1254_v25  ;;  %v272_v58 = vmul.f32 %v1132_v37, %v1256_v54  ;;  %v287_v21 = vrot.slane %v1254_v25, 3 }
  0x30   :  { %v244_v27 = vadd.f32 %v242_v40, %v239_v36  ;;  %v256_v44 = vrot.slane %v254_v29, 1  ;;  %v264_v46 = vrot.slane %v262_v41, 7  ;;  %v280_v15 = vmul.f32 %v278_v38, %v1261_v39 }
  0x31   :  { %v274_v52 = vrot.slane %v272_v58, 1  ;;  %v289_v5 = vsel %vm111_vm1, %v287_v21, %v222_v19  ;;  %v304_v24 = vrot.slane %v1256_v54, 4  ;;  %v307_v0 = vrot.slane %v1245_v30, 1 }
  0x32   :  { %v251_v63 = vadd.f32 %v249_v42, %v244_v27  ;;  %v258_v6 = vadd.f32 %v256_v44, %v253_v34  ;;  %v282_v10 = vrot.slane %v280_v15, 7  ;;  %v291_v23 = vrot.slane %v289_v5, 3 }
  0x33   :  { %v276_v7 = vadd.f32 %v274_v52, %v271_v43  ;;  %v309_v8 = vsel %vm111_vm1, %v304_v24, %v307_v0  ;;  %v314_v14 = vrot.slane %v216_v17, 1  ;;  %v319_v16 = vrot.slane %v1261_v39, 2 }
  0x34   :  { %v252_v38 = vmul.f32 0.57735026, %v251_v63  ;;  %v266_v22 = vadd.f32 %v264_v46, %v258_v6  ;;  %v293_v28 = vsel %vm58_vm0, %v291_v23, %v1237_v62  ;;  %v311_v31 = vrot.slane %v309_v8, 3 }
  0x35   :  { %v284_v35 = vadd.f32 %v282_v10, %v276_v7  ;;  %v302_v30 = vsel %vm1161_vm8, %v1237_v62, %v293_v28  ;;  %v322_v36 = vrot.slane %v1248_v53, 7  ;;  %v329_v33 = vrot.slane %v219_v18, 7 }
  0x36   :  { %v267_v59 = vmul.f32 0.57735026, %v266_v22  ;;  %v316_v17 = vsel %vm58_vm0, %v311_v31, %v314_v14  ;;  %v378_v34 = vrot.slane %v302_v30, 5  ;;  %v87_v40 = vsel %vm86_vm11, %v1078_v3, %v1233_v32 }
  0x37   :  { %v1296_v29 = vmul.f32 0.57735026, %v284_v35  ;;  %v1300_v41 = vsel %vm1161_vm8, %v314_v14, %v316_v17  ;;  %v324_v53 = vsel %vm111_vm1, %v319_v16, %v322_v36  ;;  %v90_v18 = vsel %vm88_vm12, %v89_v45, %v87_v40 }
  0x38   :  { %v326_v42 = vrot.slane %v324_v53, 3  ;;  %v380_v43 = vsel %vm111_vm1, %v378_v34, %v222_v19  ;;  %v382_v32 = vrot.slane %v1300_v41, 5  ;;  %v91_v58 = vmul.f32 0.5, %v1230_v1  ;;  %460 = vst [vmem:[#allocation2 + $0x7] sm:$0x1] %v90_v18 }
  0x39   :  { %v362_v21 = vrot.slane %v1296_v29, 3  ;;  %v466_v27 = vrot.slane %v380_v43, 4  ;;  %v370_v44 = vsel %vm58_vm0, %v302_v30, %v1237_v62  ;;  %v371_v3 = vsel %vm58_vm0, %v1300_v41, %v314_v14 }
  0x3a   :  { %v331_v45 = vsel %vm58_vm0, %v326_v42, %v329_v33  ;;  %v384_v19 = vsel %vm111_vm1, %v382_v32, %v307_v0  ;;  %v433_v46 = vrot.slane %v370_v44, 1  ;;  %v437_v1 = vrot.slane %v371_v3, 1  ;;  %v858_v44 = vld [vmem:[%s1420_s5 + $0x18] sm:$0xff] }
  0x3b   :  { %v332_v15 = vsel %vm1161_vm8, %v329_v33, %v331_v45  ;;  %v364_v52 = vsel %vm111_vm1, %v362_v21, %v267_v59  ;;  %468 = vst [vmem:[#allocation2 + $0x8] sm:$0x1] %v466_v27  ;;  %v470_v62 = vrot.slane %v384_v19, 4  ;;  %v449_v5 = vrot.slane %v1196_v11, 1 }
  0x3c   :  { %v366_v24 = vrot.slane %v364_v52, 3  ;;  %v386_v63 = vrot.slane %v332_v15, 5  ;;  %v372_v6 = vsel %vm58_vm0, %v332_v15, %v329_v33  ;;  %435 = vst [vmem:[#allocation2] sm:$0x1] %v433_v46  ;;  %439 = vst [vmem:[#allocation2 + $0x1] sm:$0x1] %v437_v1  ;;  %v178_v8 = vmul.f32 %v1235_v26, %v1107_v20 }
  0x3d   :  { %v453_v0 = vrot.slane %v1202_v49, 1  ;;  %472 = vst [vmem:[#allocation2 + $0x9] sm:$0x1] %v470_v62  ;;  %v441_v10 = vrot.slane %v372_v6, 1  ;;  %451 = vst [vmem:[#allocation2 + $0x4] sm:$0x1] %v449_v5  ;;  %v185_v16 = vmul.f32 %v1150_v47, %v1150_v47  ;;  %v190_v49 = vmul.f32 %v1154_v48, %v1154_v48 }
  0x3e   :  { %v457_v23 = vrot.slane %v1207_v13, 1  ;;  %v462_v7 = vrot.slane %v91_v58, 1  ;;  %v368_v11 = vsel %vm58_vm0, %v366_v24, %v252_v38  ;;  %v388_v14 = vsel %vm111_vm1, %v386_v63, %v322_v36  ;;  %v856_v58 = vld [vmem:[%s1420_s5 + $0x8] sm:$0xff] }
  0x3f   :  { %455 = vst [vmem:[#allocation2 + $0x5] sm:$0x1] %v453_v0  ;;  %v369_v13 = vsel %vm1161_vm8, %v252_v38, %v368_v11  ;;  %v474_v22 = vrot.slane %v388_v14, 4  ;;  %443 = vst [vmem:[#allocation2 + $0x2] sm:$0x1] %v441_v10  ;;  %v202_v26 = vmul.f32 0.5, %v178_v8 }
  0x40   :  { %459 = vst [vmem:[#allocation2 + $0x6] sm:$0x1] %v457_v23  ;;  %464 = vst [vmem:[#allocation2 + $0x18] sm:$0x1] %v462_v7  ;;  %v405_v28 = vrot.slane %v302_v30, 2  ;;  %v402_v31 = vrot.slane %v369_v13, 5  ;;  %v376_v35 = vsel %vm58_vm0, %v369_v13, %v252_v38 }
  0x41   :  { %v187_v36 = vrot.slane %v185_v16, 1  ;;  %v192_v33 = vrot.slane %v190_v49, 2  ;;  %476 = vst [vmem:[#allocation2 + $0xa] sm:$0x1] %v474_v22  ;;  %v445_v47 = vrot.slane %v376_v35, 1  ;;  %v408_v51 = vrot.slane %v1300_v41, 2 }
  0x42   :  { %v407_v48 = vsel %vm167_vm4, %v405_v28, %v1254_v25  ;;  %v410_v17 = vrot.slane %v1256_v54, 1  ;;  %v404_v34 = vsel %vm111_vm1, %v402_v31, %v267_v59  ;;  %v413_v40 = vrot.slane %v332_v15, 2  ;;  %v541_v15 = vld [vmem:[#allocation2 + $0x20] sm:$0x1]  ;;  %v935_v14 = vld [vmem:[%s1418_s2 + $0x8] sm:$0xff]  }
  0x43   :  { %v189_v30 = vadd.f32 %v187_v36, %v185_v16  ;;  %v415_v57 = vrot.slane %v1261_v39, 7  ;;  %v478_v38 = vrot.slane %v404_v34, 4  ;;  %447 = vst [vmem:[#allocation2 + $0x3] sm:$0x1] %v445_v47  ;;  %v418_v18 = vrot.slane %v1174_v4, 2 }
  0x44   :  { %v412_v53 = vsel %vm167_vm4, %v408_v51, %v410_v17  ;;  %v421_v25 = vrot.slane %v1179_v56, 2  ;;  %v429_v59 = vrot.slane %v369_v13, 2  ;;  %v502_v43 = vrot.slane %v407_v48, 7 }
  0x45   :  { %v194_v42 = vadd.f32 %v192_v33, %v189_v30  ;;  %v417_v54 = vsel %vm167_vm4, %v413_v40, %v415_v57  ;;  %480 = vst [vmem:[#allocation2 + $0xb] sm:$0x1] %v478_v38  ;;  %v420_v39 = vsel %vm167_vm4, %v418_v18, %v1132_v37  ;;  %v506_v4 = vrot.slane %v412_v53, 7 }
  0x46   :  { %v423_v41 = vsel %vm167_vm4, %v421_v25, %v1088_v9  ;;  %v952_v56 = vmov 65535   ;;  %v428_v9 = vsel %vm167_vm4, %v424_v60, %v426_v55  ;;  %v431_v37 = vsel %vm167_vm4, %v429_v59, %v1296_v29  ;;  %504 = vst [vmem:[#allocation2 + $0x10] sm:$0x1] %v502_v43 }
  0x47   :  { %v593_v32 = vsel %vm591_vm13, 4294967295, %v952_v56  ;;  %948 = vrsqrt.f32 %v194_v42  ;;  %508 = vst [vmem:[#allocation2 + $0x11] sm:$0x1] %v506_v4  ;;  %v510_v21 = vrot.slane %v417_v54, 7  ;;  %v518_v27 = vrot.slane %v420_v39, 7 }
  0x48   :  { %v540_v3 = vld [vmem:[#allocation2 + $0x18] sm:$0x1]  ;;  %v514_v45 = vrot.slane %v431_v37, 7  ;;  %v522_v19 = vrot.slane %v423_v41, 7  ;;  %v526_v46 = vrot.slane %v428_v9, 7  ;;  %v534_v12 = vrot.slane %v202_v26, 7 }
  0x49   :  { %512 = vst [vmem:[#allocation2 + $0x12] sm:$0x1] %v510_v21  ;;  %520 = vst [vmem:[#allocation2 + $0x14] sm:$0x1] %v518_v27  ;;  %v861_v55 = vmul.f32 3.0, %v857_v61  ;;  %v860_v1 = vmul.f32 3.0, %v856_v58 }
  0x4a   :  { %v537_v20 = vld [vmem:[#allocation2] sm:$0xff]  ;;  %516 = vst [vmem:[#allocation2 + $0x13] sm:$0x1] %v514_v45  ;;  %524 = vst [vmem:[#allocation2 + $0x15] sm:$0x1] %v522_v19  ;;  %v594_v29 = vsel %vm592_vm14, %v593_v32, 0 }
  0x4b   :  { %528 = vst [vmem:[#allocation2 + $0x16] sm:$0x1] %v526_v46  ;;  %536 = vst [vmem:[#allocation2 + $0x28] sm:$0x1] %v534_v12  ;;  %v543_v52 = vpack.c.bf16 %v540_v3, %v537_v20  ;;  %875 = vperm.xlu0 %932, %v861_v55   ;;  %870 = vperm.xlu1 %933, %v860_v1   ;;  %v862_v62 = vmul.f32 3.0, %v858_v44  ;;  %vm197_vm15 = vcmp.eq.f32.partialorder %v194_v42, inf }
  0x4c   :  { %v538_v5 = vld [vmem:[#allocation2 + $0x8] sm:$0xff]  ;;  %v200_v10 = vand.u32 2147483648, %v194_v42  ;;  %vm199_vm0 = vcmp.eq.f32.partialorder %v194_v42, 0.0  ;;  %vm738_vm1 = vcmask 261120  }
  0x4d   :  { %v544_v24 = vpack.c.bf16 %v541_v15, %v538_v5  ;;  %v596_v63 = vand.u32 %v594_v29, %v543_v52 }
  0x4f   :  { %v599_v6 = vand.u32 %v594_v29, %v544_v24  ;;  %880 = vperm.xlu1 %933, %v862_v62   ;;  %v937_v62 = vld [vmem:[%s1422_s4 + $0x8] sm:$0xff]  }
  0x51   :  { %618 = vmatprep.subr.bf16.mxu0 %v599_v6 }
  0x52   :  { %619 = vmatpush1.bf16.msra.mxu0 %v596_v63  ;;  %v542_v16 = vld [vmem:[#allocation2 + $0x28] sm:$0x1] }
  0x54   :  { %v949_v0 = vpop.eup %948 }
  0x55   :  { %v196_v23 = vmul.f32 %v949_v0, %v194_v42  ;;  %898 = vmatmul.mubr.msk.bf16.vlgmr.msra.gmra.mxu0 %vm584_vm9, %v1159_v50  ;;  %v936_v50 = vld [vmem:[%s1422_s4] sm:$0xff]  }
  0x56   :  { %646 = vmatprep.mubr.bf16.mxu0 %v950_v2 }
  0x57   :  { %v198_v7 = vsel %vm197_vm15, %v194_v42, %v196_v23 }
  0x58   :  { %v201_v8 = vsel %vm199_vm0, %v200_v10, %v198_v7 }
  0x59   :  { %v530_v11 = vrot.slane %v201_v8, 6 }
  0x5b   :  { %532 = vst [vmem:[#allocation2 + $0x17] sm:$0x1] %v530_v11 }
  0x5d   :  { %899 = vmatmul.mubr.msk.bf16.gmra.mxu0 %vm584_vm9, %v935_v14 }
  0x5e   :  { %925 = vmatprep.mubr.msk.bf16.mxu0 %vm738_vm1, %v936_v50 }
  0x62   :  { %v539_v49 = vld [vmem:[#allocation2 + $0x10] sm:$0xff] }
  0x63   :  { %v545_v13 = vpack.c.bf16 %v542_v16, %v539_v49 }
  0x65   :  { %v602_v22 = vand.u32 %v594_v29, %v545_v13 }
  0x67   :  { %915 = vmatprep.subr.bf16.mxu1 %v602_v22 }
  0x68   :  { %916 = vmatpush3.bf16.msra.mxu1 %v602_v22 }
  0x6b   :  { %918 = vmatmul.mubr.msk.bf16.vlgmr.msra.gmra.mxu1 %vm584_vm9, %v935_v14 }
  0x6c   :  { %777 = vmatprep.mubr.bf16.mxu1 %v950_v2 }
  0x7d   :  { %v567_v35 = vpop.permute.xlu0 %566 }
  0x7e   :  { %v557_v36 = vpop.permute.xlu1 %556 }
  0x81   :  { %v572_v51 = vpop.permute.xlu0 %571 }
  0x82   :  { %v562_v17 = vpop.permute.xlu1 %561 }
  0x9a   :  { %v866_v0 = vpop.permute.xlu0 %865 }
  0xc6   :  { %v871_v11 = vpop.permute.xlu1 %870  ;;  %v876_v13 = vpop.permute.xlu0 %875 }
 0x115   :  { %v638_v26 = vpop.f32.mrf.mxu0 }
 0x116   :  { %v639_v41 = vadd.f32 %v638_v26, %v557_v36 }
 0x117   :  { %v640_v28 = vpop.f32.mrf.mxu0 }
 0x118   :  { %v641_v18 = vadd.f32 %v640_v28, %v557_v36  ;;  %v706_v37 = vmax.f32 %v639_v41, 0.0 }
 0x119   :  { %v642_v31 = vpop.f32.mrf.mxu0 }
 0x11a   :  { %v643_v42 = vadd.f32 %v642_v31, %v562_v17  ;;  %v707_v4 = vmax.f32 %v641_v18, 0.0 }
 0x11b   :  { %v644_v33 = vpop.f32.mrf.mxu0 }
 0x11c   :  { %v645_v30 = vadd.f32 %v644_v33, %v562_v17  ;;  %v709_v32 = vmax.f32 %v643_v42, 0.0 }
 0x11d   :  { %v648_v47 = vpop.f32.mrf.mxu0 }
 0x11e   :  { %v649_v38 = vadd.f32 %v648_v47, %v567_v35  ;;  %v710_v60 = vmax.f32 %v645_v30, 0.0  ;;  %v722_v44 = vpack.c.bf16 %v709_v32, %v706_v37 }
 0x11f   :  { %v650_v48 = vpop.f32.mrf.mxu0 }
 0x120   :  { %v651_v40 = vadd.f32 %v650_v48, %v567_v35  ;;  %v712_v43 = vmax.f32 %v649_v38, 0.0  ;;  %v723_v9 = vpack.c.bf16 %v710_v60, %v707_v4  ;;  %v881_v48 = vpop.permute.xlu1 %880 }
 0x121   :  { %v652_v34 = vpop.f32.mrf.mxu0 }
 0x122   :  { %v653_v57 = vadd.f32 %v652_v34, %v572_v51  ;;  %v713_v59 = vmax.f32 %v651_v40, 0.0 }
 0x123   :  { %v654_v53 = vpop.f32.mrf.mxu0 }
 0x124   :  { %v655_v25 = vadd.f32 %v654_v53, %v572_v51  ;;  %v715_v54 = vmax.f32 %v653_v57, 0.0 }
 0x126   :  { %v716_v39 = vmax.f32 %v655_v25, 0.0  ;;  %v725_v61 = vpack.c.bf16 %v715_v54, %v712_v43 }
 0x128   :  { %v726_v56 = vpack.c.bf16 %v716_v39, %v713_v59 }
 0x12a   :  { %757 = vmatprep.subr.bf16.mxu1 %v726_v56 }
 0x12b   :  { %v919_v58 = vpop.f32.mrf.mxu1  ;;  %758 = vmatpush1.bf16.msra.mxu1 %v725_v61 }
 0x12c   :  { %v700_v21 = vadd.f32 %v919_v58, %v567_v35  ;;  %759 = vmatprep.subr.bf16.mxu1 %v723_v9 }
 0x12d   :  { %v691_v27 = vpop.f32.mrf.mxu1 }
 0x12e   :  { %v692_v3 = vadd.f32 %v691_v27, %v557_v36  ;;  %v714_v19 = vmax.f32 %v700_v21, 0.0 }
 0x12f   :  { %v920_v45 = vpop.f32.mrf.mxu1  ;;  %760 = vmatpush1.bf16.msra.mxu1 %v722_v44 }
 0x130   :  { %v703_v46 = vadd.f32 %v920_v45, %v572_v51  ;;  %v708_v55 = vmax.f32 %v692_v3, 0.0 }
 0x131   :  { %v694_v12 = vpop.f32.mrf.mxu1 }
 0x132   :  { %v717_v1 = vmax.f32 %v703_v46, 0.0  ;;  %v695_v15 = vadd.f32 %v694_v12, %v562_v17  ;;  %904 = vmatmul.mubr.msk.bf16.vlgmr.msra.gmra.mxu1 %vm738_vm1, %v936_v50 }
 0x133   :  { %787 = vmatprep.mubr.bf16.mxu1 %v950_v2 }
 0x134   :  { %v727_v20 = vpack.c.bf16 %v717_v1, %v714_v19  ;;  %v711_v29 = vmax.f32 %v695_v15, 0.0 }
 0x136   :  { %v724_v52 = vpack.c.bf16 %v711_v29, %v708_v55  ;;  %921 = vmatprep.subr.bf16.mxu0 %v727_v20 }
 0x137   :  { %922 = vmatpush3.bf16.msra.mxu0 %v727_v20 }
 0x138   :  { %923 = vmatprep.subr.bf16.mxu0 %v724_v52 }
 0x13a   :  { %905 = vmatmul.mubr.msk.bf16.gmra.mxu1 %vm738_vm1, %v937_v62 }
 0x13b   :  { %924 = vmatpush3.bf16.msra.mxu0 %v724_v52 }
 0x13e   :  { %926 = vmatmul.mubr.msk.bf16.vlgmr.msra.gmra.mxu0 %vm738_vm1, %v937_v62 }
 0x1f2   :  { %v779_v5 = vpop.f32.mrf.mxu1 }
 0x1f4   :  { %v781_v24 = vpop.f32.mrf.mxu1 }
 0x1f5   :  { %v847_v2 = vadd.f32 %v781_v24, %v779_v5 }
 0x1f6   :  { %v783_v63 = vpop.f32.mrf.mxu1 }
 0x1f8   :  { %v785_v6 = vpop.f32.mrf.mxu1 }
 0x1f9   :  { %v848_v50 = vadd.f32 %v785_v6, %v783_v63 }
 0x1fa   :  { %v789_v10 = vpop.f32.mrf.mxu1 }
 0x1fc   :  { %v791_v23 = vpop.f32.mrf.mxu1 }
 0x1fd   :  { %v849_v8 = vadd.f32 %v791_v23, %v789_v10 }
 0x1fe   :  { %v927_v7 = vpop.f32.mrf.mxu0  ;;  %v793_v14 = vpop.f32.mrf.mxu1 }
 0x1ff   :  { %v853_v49 = vadd.f32 %v927_v7, %v849_v8 }
 0x200   :  { %v832_v16 = vpop.f32.mrf.mxu0  ;;  %v795_v26 = vpop.f32.mrf.mxu1 }
 0x201   :  { %v851_v22 = vadd.f32 %v847_v2, %v832_v16  ;;  %v885_v31 = vadd.f32 %v876_v13, %v853_v49  ;;  %v850_v35 = vadd.f32 %v795_v26, %v793_v14 }
 0x202   :  { %v928_v28 = vpop.f32.mrf.mxu0 }
 0x203   :  { %v883_v36 = vadd.f32 %v866_v0, %v851_v22  ;;  %889 = vst [vmem:[%s1423_s6 + $0x10] sm:$0xff] %v885_v31  ;;  %v854_v47 = vadd.f32 %v928_v28, %v850_v35 }
 0x204   :  { %v835_v33 = vpop.f32.mrf.mxu0 }
 0x205   :  { %887 = vst [vmem:[%s1423_s6] sm:$0xff] %v883_v36  ;;  %v852_v51 = vadd.f32 %v848_v50, %v835_v33  ;;  %v886_v17 = vadd.f32 %v881_v48, %v854_v47 }
 0x207   :  { %v884_v34 = vadd.f32 %v871_v11, %v852_v51  ;;  %890 = vst [vmem:[%s1423_s6 + $0x18] sm:$0xff] %v886_v17 }
 0x209   :  { %888 = vst [vmem:[%s1423_s6 + $0x8] sm:$0xff] %v884_v34 }

</bundles_post_ra>
